<compile_context>
chip_gen: v7x
topology: tpu7x:2x2x1
jax: 0.10.0
libtpu: 0.0.40
codegen_flags: <defaults>
</compile_context>

<pallas_src>
import jax
import jax.numpy as jnp
from jax.experimental import pallas as pl
from jax.experimental.pallas import tpu as pltpu


_LANE = 128
_SUBLANE_BF16 = 16  # bf16 packs 16 rows per vreg


def _round_up(x, m):
    return ((x + m - 1) // m) * m


def _tensorcore_count():
    """Best-effort TensorCores-per-device (v7x has 2).  Falls back to 1."""
    try:
        dev = jax.devices()[0]
        for attr in ("num_cores", "core_count", "num_tensorcores"):
            v = getattr(dev, attr, None)
            if isinstance(v, int) and v > 0:
                return v
    except Exception:
        pass
    return 1


def _vmem_capacity_bytes():
    """Per-generation VMEM capacity (128 MiB v5e/v6e, 64 MiB v7x)."""
    try:
        info = pltpu.get_tpu_info()
        cap = getattr(info, "vmem_capacity_bytes", None)
        if cap:
            return int(cap)
    except Exception:
        pass
    return 64 * 1024 * 1024  # conservative default (v7x)


def _mlp_kernel(x_ref, w1_ref, b1_ref, w2_ref, b2_ref, o_ref):
    # In-kernel bf16 cast of the x tile (free VPU filler under DMA/MXU).
    x = x_ref[...].astype(jnp.bfloat16)
    # fc1: bf16 @ bf16 -> f32 accumulate; bias + ReLU in f32.
    h = jnp.dot(x, w1_ref[...], preferred_element_type=jnp.float32)
    h = jnp.maximum(h + b1_ref[...], 0.0)
    # fc2: bf16 downcast of the activation for the MXU, f32 accumulate.
    out = jnp.dot(h.astype(jnp.bfloat16), w2_ref[...],
                  preferred_element_type=jnp.float32)
    out = out + b2_ref[...]
    o_ref[...] = out.astype(o_ref.dtype)


def prepare_params(w1, b1, w2, b2):
    """One-time parameter prep (keep OUT of the per-step hot path).

    PyTorch nn.Linear convention in:  w1 (hidden, in), b1 (hidden,),
                                      w2 (out, hidden), b2 (out,).
    Returns pre-transposed bf16 weights with the output dim zero-padded to a
    multiple of 128 lanes, f32 row-biases, and the true out_features.
    """
    hidden, in_features = w1.shape
    out_features = w2.shape[0]
    out_p = _round_up(out_features, _LANE)

    w1_t = jnp.asarray(w1, jnp.float32).T.astype(jnp.bfloat16)      # (in, hidden)
    w2_t = jnp.zeros((hidden, out_p), jnp.bfloat16)
    w2_t = w2_t.at[:, :out_features].set(
        jnp.asarray(w2, jnp.float32).T.astype(jnp.bfloat16))        # (hidden, out_p)
    b1_r = jnp.asarray(b1, jnp.float32).reshape(1, hidden)
    b2_r = jnp.zeros((1, out_p), jnp.float32)
    b2_r = b2_r.at[:, :out_features].set(jnp.asarray(b2, jnp.float32))
    return w1_t, b1_r, w2_t, b2_r, out_features


def feed_forward(x, w1_t, b1_r, w2_t, b2_r, out_features, *,
                 block_b=1024, out_dtype=jnp.bfloat16, return_padded=False):
    """x: (B, in_features) in its native dtype.  Params from prepare_params.

    Returns (B, out_features) in `out_dtype`, or the lane-padded
    (b_pad, out_p) slab when return_padded=True (lets a fused consumer skip
    the post-call slice copy).
    """
    B, in_features = x.shape
    hidden = w1_t.shape[1]
    out_p = w2_t.shape[1]
    out_itemsize = jnp.dtype(out_dtype).itemsize

    # ---- batch tiling ----------------------------------------------------
    # Big tiles amortize the ~0.35 us per-grid-step cost; >=2 tiles when the
    # device has 2 TensorCores (v7x) so "parallel" actually shards; tb is a
    # multiple of 16 and derived from ceil(B/n) so padding stays < 16 rows
    # per tile.
    cores = _tensorcore_count()
    min_tiles = cores if (cores > 1 and B >= cores * _SUBLANE_BF16) else 1
    n_tiles = max(pl.cdiv(B, block_b), min_tiles)
    tb = _round_up(pl.cdiv(B, n_tiles), _SUBLANE_BF16)
    b_pad = n_tiles * tb

    # Tiny zero-pad (< 16 rows/tile) only when B doesn't line up; no dtype
    # cast happens in the wrapper.
    x_in = x if b_pad == B else jnp.pad(x, ((0, b_pad - B), (0, 0)))

    grid = (n_tiles,)

    # Advisory cost hint: at toy shapes the kernel is latency-bound.
    flops = 2 * b_pad * in_features * hidden + 2 * b_pad * hidden * out_p
    bytes_accessed = (x_in.size * x_in.dtype.itemsize
                      + w1_t.size * 2 + w2_t.size * 2
                      + b1_r.size * 4 + b2_r.size * 4
                      + b_pad * out_p * out_itemsize)
    cost = pl.CostEstimate(flops=flops, transcendentals=0,
                           bytes_accessed=bytes_accessed)

    # VMEM budget: double-buffered x/out tiles + resident weights/biases,
    # per-generation cap with headroom (no hard 64 MiB cap on 128 MiB chips).
    vmem_need = (2 * (tb * in_features * x_in.dtype.itemsize
                      + tb * out_p * out_itemsize)
                 + 2 * (in_features * hidden * 2 + hidden * out_p * 2)
                 + 4 * (hidden + out_p))
    vmem_cap = _vmem_capacity_bytes()
    vmem_limit = min(int(vmem_cap * 0.8),
                     max(32 * 1024 * 1024, int(vmem_need * 2)))

    out_padded = pl.pallas_call(
        _mlp_kernel,
        out_shape=jax.ShapeDtypeStruct((b_pad, out_p), out_dtype),
        grid_spec=pltpu.PrefetchScalarGridSpec(
            num_scalar_prefetch=0,
            grid=grid,
            in_specs=[
                pl.BlockSpec((tb, in_features), lambda i: (i, 0)),      # x tile
                pl.BlockSpec((in_features, hidden), lambda i: (0, 0)),  # W1 resident
                pl.BlockSpec((1, hidden), lambda i: (0, 0)),            # b1 resident
                pl.BlockSpec((hidden, out_p), lambda i: (0, 0)),        # W2 resident
                pl.BlockSpec((1, out_p), lambda i: (0, 0)),             # b2 resident
            ],
            out_specs=pl.BlockSpec((tb, out_p), lambda i: (i, 0)),
        ),
        compiler_params=pltpu.CompilerParams(
            dimension_semantics=("parallel",),   # megacore sharding on v7x
            vmem_limit_bytes=vmem_limit,
        ),
        cost_estimate=cost,
    )(x_in, w1_t, b1_r, w2_t, b2_r)

    if return_padded:
        return out_padded
    # Narrow-width materialized output (slice is half the bytes now that the
    # slab is bf16); fused consumers should prefer return_padded=True.
    return out_padded[:B, :out_features]


if __name__ == "__main__":
    # Small shapes consistent with the module: batch=8, input_size=32,
    # hidden_size=128 (module default), output_size=10 (module default).
    B, IN, HID, OUT = 8, 32, 128, 10

    key = jax.random.PRNGKey(0)
    kx, kw1, kb1, kw2, kb2 = jax.random.split(key, 5)

    x = jax.random.normal(kx, (B, IN), dtype=jnp.float32)
    # Deterministic synthetic params (PyTorch nn.Linear shapes).
    w1 = jax.random.normal(kw1, (HID, IN), dtype=jnp.float32) * 0.05
    b1 = jax.random.normal(kb1, (HID,), dtype=jnp.float32) * 0.05
    w2 = jax.random.normal(kw2, (OUT, HID), dtype=jnp.float32) * 0.05
    b2 = jax.random.normal(kb2, (OUT,), dtype=jnp.float32) * 0.05

    # One-time prep (transpose / pad / bf16 cast) outside the hot path.
    params = prepare_params(w1, b1, w2, b2)

    out = feed_forward(x, *params)
    jax.block_until_ready(out)
    assert out.shape == (B, OUT)
    out_f32 = out.astype(jnp.float32)

    # Precision-matched pure-JAX reference (bf16 operand rounding, f32
    # accumulation, bf16 hidden & output rounding) for a tight check.
    x_bf = x.astype(jnp.bfloat16).astype(jnp.float32)
    w1_bf = w1.astype(jnp.bfloat16).astype(jnp.float32)
    w2_bf = w2.astype(jnp.bfloat16).astype(jnp.float32)
    h_ref = jnp.maximum(x_bf @ w1_bf.T + b1, 0.0)
    h_ref = h_ref.astype(jnp.bfloat16).astype(jnp.float32)
    ref = (h_ref @ w2_bf.T + b2).astype(jnp.bfloat16).astype(jnp.float32)
    assert jnp.allclose(out_f32, ref, atol=1e-2, rtol=2e-2), \
        f"max abs err {jnp.max(jnp.abs(out_f32 - ref))}"

    # Loose sanity check against the full-f32 PyTorch-equivalent math.
    ref_f32 = jnp.maximum(x @ w1.T + b1, 0.0) @ w2.T + b2
    assert jnp.allclose(out_f32, ref_f32, atol=3e-2, rtol=3e-2), \
        f"max abs err vs f32 ref {jnp.max(jnp.abs(out_f32 - ref_f32))}"

    print("KERNEL_OK")
</pallas_src>

<mosaic_0001>
module attributes {stable_mosaic.version = 11 : i64} {
  func.func @_mlp_kernel(%arg0: i32, %arg1: memref<16x32xf32, #tpu.memory_space<vmem>>, %arg2: memref<32x128xbf16, #tpu.memory_space<vmem>>, %arg3: memref<1x128xf32, #tpu.memory_space<vmem>>, %arg4: memref<128x128xbf16, #tpu.memory_space<vmem>>, %arg5: memref<1x128xf32, #tpu.memory_space<vmem>>, %arg6: memref<16x128xbf16, #tpu.memory_space<vmem>>) attributes {dimension_semantics = [#tpu.dimension_semantics<parallel>], iteration_bounds = array<i64: 1>, scalar_prefetch = 0 : i64, scratch_operands = 0 : i64, tpu.core_type = #tpu.core_type<tc>, window_params = [{transform_indices = @transform_0, window_bounds = array<i64: 16, 32>}, {pipeline_mode = #tpu.pipeline_mode<synchronous>, transform_indices = @transform_1, window_bounds = array<i64: 32, 128>}, {pipeline_mode = #tpu.pipeline_mode<synchronous>, transform_indices = @transform_2, window_bounds = array<i64: 1, 128>}, {pipeline_mode = #tpu.pipeline_mode<synchronous>, transform_indices = @transform_3, window_bounds = array<i64: 128, 128>}, {pipeline_mode = #tpu.pipeline_mode<synchronous>, transform_indices = @transform_4, window_bounds = array<i64: 1, 128>}, {transform_indices = @transform_5, window_bounds = array<i64: 16, 128>}]} {
    %c0 = arith.constant 0 : index
    %c0_0 = arith.constant 0 : index
    %0 = vector.load %arg1[%c0, %c0_0] : memref<16x32xf32, #tpu.memory_space<vmem>>, vector<16x32xf32>
    %1 = arith.truncf %0 : vector<16x32xf32> to vector<16x32xbf16>
    %c0_1 = arith.constant 0 : index
    %c0_2 = arith.constant 0 : index
    %2 = vector.load %arg2[%c0_1, %c0_2] : memref<32x128xbf16, #tpu.memory_space<vmem>>, vector<32x128xbf16>
    %cst = arith.constant dense<0.000000e+00> : vector<16x128xf32>
    %3 = tpu.matmul %1, %2, %cst {dimension_numbers = #tpu.dot_dimension_numbers<[1], [0], [0], [1], [0, 0, 1, 1], [], []>} : vector<16x32xbf16>, vector<32x128xbf16>, vector<16x128xf32> -> vector<16x128xf32>
    %c0_3 = arith.constant 0 : index
    %c0_4 = arith.constant 0 : index
    %4 = vector.load %arg3[%c0_3, %c0_4] : memref<1x128xf32, #tpu.memory_space<vmem>>, vector<1x128xf32>
    %5 = vector.broadcast %4 : vector<1x128xf32> to vector<16x128xf32>
    %6 = arith.addf %3, %5 : vector<16x128xf32>
    %cst_5 = arith.constant 0.000000e+00 : f32
    %7 = vector.broadcast %cst_5 : f32 to vector<16x128xf32>
    %8 = arith.maximumf %6, %7 : vector<16x128xf32>
    %9 = arith.truncf %8 : vector<16x128xf32> to vector<16x128xbf16>
    %c0_6 = arith.constant 0 : index
    %c0_7 = arith.constant 0 : index
    %10 = vector.load %arg4[%c0_6, %c0_7] : memref<128x128xbf16, #tpu.memory_space<vmem>>, vector<128x128xbf16>
    %cst_8 = arith.constant dense<0.000000e+00> : vector<16x128xf32>
    %11 = tpu.matmul %9, %10, %cst_8 {dimension_numbers = #tpu.dot_dimension_numbers<[1], [0], [0], [1], [0, 0, 1, 1], [], []>} : vector<16x128xbf16>, vector<128x128xbf16>, vector<16x128xf32> -> vector<16x128xf32>
    %c0_9 = arith.constant 0 : index
    %c0_10 = arith.constant 0 : index
    %12 = vector.load %arg5[%c0_9, %c0_10] : memref<1x128xf32, #tpu.memory_space<vmem>>, vector<1x128xf32>
    %13 = vector.broadcast %12 : vector<1x128xf32> to vector<16x128xf32>
    %14 = arith.addf %11, %13 : vector<16x128xf32>
    %15 = arith.truncf %14 : vector<16x128xf32> to vector<16x128xbf16>
    %c0_11 = arith.constant 0 : index
    %c0_12 = arith.constant 0 : index
    %16 = vector.load %arg6[%c0_11, %c0_12] : memref<16x128xbf16, #tpu.memory_space<vmem>>, vector<16x128xbf16>
    tpu.vector_store %arg6[%c0_11, %c0_12], %15 {strides = array<i32>} : memref<16x128xbf16, #tpu.memory_space<vmem>>, vector<16x128xbf16>,
    return
  }
  func.func @transform_0(%arg0: i32) -> (i32, i32) {
    %c0_i32 = arith.constant 0 : i32
    %c0_i32_0 = arith.constant 0 : i32
    return %arg0, %c0_i32 : i32, i32
  }
  func.func @transform_1(%arg0: i32) -> (i32, i32) {
    %c0_i32 = arith.constant 0 : i32
    %c0_i32_0 = arith.constant 0 : i32
    %c0_i32_1 = arith.constant 0 : i32
    return %c0_i32, %c0_i32_0 : i32, i32
  }
  func.func @transform_2(%arg0: i32) -> (i32, i32) {
    %c0_i32 = arith.constant 0 : i32
    %c0_i32_0 = arith.constant 0 : i32
    %c0_i32_1 = arith.constant 0 : i32
    return %c0_i32, %c0_i32_0 : i32, i32
  }
  func.func @transform_3(%arg0: i32) -> (i32, i32) {
    %c0_i32 = arith.constant 0 : i32
    %c0_i32_0 = arith.constant 0 : i32
    %c0_i32_1 = arith.constant 0 : i32
    return %c0_i32, %c0_i32_0 : i32, i32
  }
  func.func @transform_4(%arg0: i32) -> (i32, i32) {
    %c0_i32 = arith.constant 0 : i32
    %c0_i32_0 = arith.constant 0 : i32
    %c0_i32_1 = arith.constant 0 : i32
    return %c0_i32, %c0_i32_0 : i32, i32
  }
  func.func @transform_5(%arg0: i32) -> (i32, i32) {
    %c0_i32 = arith.constant 0 : i32
    %c0_i32_0 = arith.constant 0 : i32
    return %arg0, %c0_i32 : i32, i32
  }
}

</mosaic_0001>

<bundles_post_ra>
// kernel: tpu_custom_call.1
= control target key start
LH: loop header
LB: loop body
LE: loop exit
PB: predicated region body
PF: predicated region fallthrough
CT: control target
= control target key end

     0   :  { %10 = vsyncpa [#allocation3], 0  ;;  %s556_s0 = inlined_call_operand.hbm [shape: f32[16,32], index: 0, kind: input, shape index: {}]   ;;  %s557_s1 = inlined_call_operand.hbm [shape: bf16[32,128], index: 1, kind: input, shape index: {}]   ;;  %s558_s2 = inlined_call_operand.vmem [shape: f32[1,128], index: 2, kind: input, shape index: {}]   ;;  %s559_s3 = inlined_call_operand.hbm [shape: bf16[128,128], index: 3, kind: input, shape index: {}]   ;;  %s560_s4 = inlined_call_operand.vmem [shape: f32[1,128], index: 4, kind: input, shape index: {}]   ;;  %s561_s5 = inlined_call_operand.hbm [shape: bf16[16,128], index: 5, kind: output, shape index: {}]  }
   0x1   :  { %11 = vsyncpa [#allocation6], 0 }
   0x2   :  { %12 = vsyncpa [#allocation4], 0  ;;  %s453_s18 = smov [#allocation5]   ;;  %s359_s22 = scalar_lea.hbm %s557_s1, 256 }
   0x3   :  { %s30_s19 = sshll.u32 %s453_s18, 4  ;;  %p360_p0 = scmp.ne.s32.totalorder %s557_s1, %s359_s22  ;;  %s31_s19 = int_to_ptr.vmem [resolvable:$true] %s30_s19 }
   0x4   :  { %p363_p1 = scmp.lt.u32.totalorder %s359_s22, %s557_s1 }
   0x6   :  { %p365_p2 = pnand %p363_p1, %p360_p0 }
   0x8   :  { %368 = shalt.err (!%p365_p2)
}
   0x9   :  { %s369_s27 = scalar_lea.vmem %s31_s19, 256  ;;  %p374_p4 = scmp.lt.s32.totalorder %s31_s19, %s31_s19 }
   0xa   :  { %p370_p3 = scmp.ne.s32.totalorder %s31_s19, %s369_s27  ;;  %p375_p5 = scmp.lt.s32.totalorder %s369_s27, %s369_s27 }
   0xc   :  { %p376_p6 = por %p375_p5, %p374_p4 }
   0xe   :  { %p377_p7 = pnand %p376_p6, %p370_p3 }
  0x10   :  { %380 = shalt.err (!%p377_p7)
}
  0x11   :  { %s454_s28 = smov 64   ;;  %s455_s29 = smov 4  }
  0x12   :  { %36 = dma.hbm_to_vmem [thread:$0]  %s557_s1, 256, %s31_s19, [#allocation6], %s454_s28, %s454_s28, %s455_s29  }
  0x13   :  { %s456_s7 = smov [#allocation2]   ;;  %s381_s11 = scalar_lea.hbm %s556_s0, 256 }
  0x14   :  { %s18_s8 = sshll.u32 %s456_s7, 4  ;;  %p382_p8 = scmp.ne.s32.totalorder %s556_s0, %s381_s11  ;;  %s19_s8 = int_to_ptr.vmem [resolvable:$true] %s18_s8 }
  0x15   :  { %p385_p9 = scmp.lt.u32.totalorder %s381_s11, %s556_s0 }
  0x17   :  { %p387_p10 = pnand %p385_p9, %p382_p8 }
  0x19   :  { %390 = shalt.err (!%p387_p10)
}
  0x1a   :  { %s391_s16 = scalar_lea.vmem %s19_s8, 256  ;;  %p396_p12 = scmp.lt.s32.totalorder %s19_s8, %s19_s8 }
  0x1b   :  { %p392_p11 = scmp.ne.s32.totalorder %s19_s8, %s391_s16  ;;  %p397_p13 = scmp.lt.s32.totalorder %s391_s16, %s391_s16 }
  0x1d   :  { %p398_p0 = por %p397_p13, %p396_p12 }
  0x1f   :  { %p399_p1 = pnand %p398_p0, %p392_p11 }
  0x21   :  { %402 = shalt.err (!%p399_p1)
}
  0x22   :  { %s457_s1 = smov 128   ;;  %s458_s17 = smov 8  }
  0x23   :  { %24 = dma.hbm_to_vmem [thread:$0]  %s556_s0, 256, %s19_s8, [#allocation3], %s457_s1, %s457_s1, %s458_s17  }
  0x24   :  { %s459_s20 = smov [#allocation7]   ;;  %s403_s24 = scalar_lea.hbm %s559_s3, 1024 }
  0x25   :  { %s44_s21 = sshll.u32 %s459_s20, 4  ;;  %p404_p2 = scmp.ne.s32.totalorder %s559_s3, %s403_s24  ;;  %s45_s21 = int_to_ptr.vmem [resolvable:$true] %s44_s21 }
  0x26   :  { %p407_p3 = scmp.lt.u32.totalorder %s403_s24, %s559_s3 }
  0x28   :  { %p409_p4 = pnand %p407_p3, %p404_p2 }
  0x2a   :  { %412 = shalt.err (!%p409_p4)
}
  0x2b   :  { %s413_s6 = scalar_lea.vmem %s45_s21, 1024  ;;  %p418_p6 = scmp.lt.s32.totalorder %s45_s21, %s45_s21 }
  0x2c   :  { %p414_p5 = scmp.ne.s32.totalorder %s45_s21, %s413_s6  ;;  %p419_p7 = scmp.lt.s32.totalorder %s413_s6, %s413_s6 }
  0x2e   :  { %p420_p8 = por %p419_p7, %p418_p6 }
  0x30   :  { %p421_p9 = pnand %p420_p8, %p414_p5 }
  0x32   :  { %424 = shalt.err (!%p421_p9)
}
  0x33   :  { %50 = dma.hbm_to_vmem [thread:$0]  %s559_s3, 1024, %s45_s21, [#allocation6], %s454_s28, %s454_s28, %s455_s29  }
  0x34   :  { %447 = dma.done.wait [#allocation3], 256  }
  0x35   :  { %448 = vsyncadd [#allocation3], 4294967040 }
  0x36   :  { %449 = dma.done.wait [#allocation6], 1280  }
  0x37   :  { %450 = vsyncadd [#allocation6], 4294966016  ;;  %v460_v0 = vmov 0.0   ;;  %vm461_vm0 = vmmov 0   ;;  %v349_v1 = vld [vmem:[#allocation5] sm:$0xff]   ;;  %v350_v2 = vld [vmem:[#allocation5 + $0x8] sm:$0xff]  }
  0x38   :  { %311 = vmatprep.subr.bf16.mxu0 %v460_v0  ;;  %315 = vmatprep.mubr.msk.bf16.mxu0 %vm461_vm0, %v460_v0  ;;  %v63_v3 = vld [vmem:[#allocation2] sm:$0xff]  ;;  %v64_v4 = vld [vmem:[#allocation2 + $0x8] sm:$0xff]  ;;  %vm89_vm1 = vcmask 261120   ;;  %v353_v8 = vld [vmem:[#allocation7 + $0x10] sm:$0xff]   ;;  %s462_s11 = smov [#allocation8]  }
  0x39   :  { %319 = vmatprep.subr.bf16.mxu1 %v460_v0  ;;  %335 = vmatprep.mubr.msk.bf16.mxu1 %vm461_vm0, %v460_v0  ;;  %v351_v5 = vld [vmem:[#allocation7] sm:$0xff]   ;;  %v65_v6 = vpack.c.bf16 %v64_v4, %v63_v3  ;;  %v352_v7 = vld [vmem:[#allocation7 + $0x8] sm:$0xff]   ;;  %v354_v9 = vld [vmem:[#allocation7 + $0x18] sm:$0xff]   ;;  %s264_s12 = sshll.u32 %s462_s11, 4  ;;  %s265_s12 = int_to_ptr.vmem [resolvable:$true] %s264_s12 }
  0x3a   :  { %312 = vmatpush3.bf16.msra.mxu0 %v349_v1  ;;  %320 = vmatpush3.bf16.msra.mxu1 %v351_v5  ;;  %v355_v10 = vld [vmem:[#allocation7 + $0x20] sm:$0xff]   ;;  %v356_v11 = vld [vmem:[#allocation7 + $0x28] sm:$0xff]   ;;  %v357_v12 = vld [vmem:[#allocation7 + $0x30] sm:$0xff]   ;;  %p430_p11 = scmp.lt.s32.totalorder %s265_s12, %s265_s12 }
  0x3b   :  { %313 = vmatprep.subr.bf16.mxu0 %v460_v0  ;;  %321 = vmatprep.subr.bf16.mxu1 %v460_v0  ;;  %v358_v13 = vld [vmem:[#allocation7 + $0x38] sm:$0xff]   ;;  %v277_v14 = vld [vmem:[%s558_s2] ss:$0 sm:$0xff]  ;;  %s425_s2 = scalar_lea.vmem %s265_s12, 128 }
  0x3c   :  { %v281_v24 = vld [vmem:[%s560_s4] ss:$0 sm:$0xff]  ;;  %p426_p10 = scmp.ne.s32.totalorder %s265_s12, %s425_s2  ;;  %p431_p12 = scmp.lt.s32.totalorder %s425_s2, %s425_s2 }
  0x3e   :  { %314 = vmatpush3.bf16.msra.mxu0 %v350_v2  ;;  %322 = vmatpush3.bf16.msra.mxu1 %v352_v7  ;;  %p432_p13 = por %p431_p12, %p430_p11 }
  0x3f   :  { %323 = vmatprep.subr.bf16.mxu1 %v460_v0 }
  0x40   :  { %p433_p0 = pnand %p432_p13, %p426_p10 }
  0x41   :  { %316 = vmatmul.mubr.msk.bf16.vlgmr.msra.gmra.mrb[0].mxu0 %vm89_vm1, %v65_v6 }
  0x42   :  { %324 = vmatpush3.bf16.msra.mxu1 %v353_v8 }
  0x43   :  { %325 = vmatprep.subr.bf16.mxu1 %v460_v0 }
  0x46   :  { %326 = vmatpush3.bf16.msra.mxu1 %v354_v9 }
  0x47   :  { %327 = vmatprep.subr.bf16.mxu1 %v460_v0 }
  0x4a   :  { %328 = vmatpush3.bf16.msra.mxu1 %v355_v10 }
  0x4b   :  { %329 = vmatprep.subr.bf16.mxu1 %v460_v0 }
  0x4e   :  { %330 = vmatpush3.bf16.msra.mxu1 %v356_v11 }
  0x4f   :  { %331 = vmatprep.subr.bf16.mxu1 %v460_v0 }
  0x52   :  { %332 = vmatpush3.bf16.msra.mxu1 %v357_v12 }
  0x53   :  { %333 = vmatprep.subr.bf16.mxu1 %v460_v0 }
  0x56   :  { %334 = vmatpush3.bf16.msra.mxu1 %v358_v13 }
 0x114   :  { %v127_v15 = vpop.f32.mrb[0].mxu0 }
 0x115   :  { %v128_v16 = vadd.f32 %v277_v14, %v127_v15  ;;  %v317_v17 = vpop.f32.mrb[1].mxu0 }
 0x116   :  { %v130_v18 = vpop.f32.mrb[2].mxu0 }
 0x117   :  { %v131_v19 = vadd.f32 %v277_v14, %v130_v18  ;;  %v318_v20 = vpop.f32.mrb[3].mxu0  ;;  %v134_v21 = vmax.f32 %v128_v16, 0.0 }
 0x119   :  { %v135_v22 = vmax.f32 %v131_v19, 0.0 }
 0x11b   :  { %v136_v23 = vpack.c.bf16 %v135_v22, %v134_v21 }
 0x11d   :  { %336 = vmatmul.mubr.bf16.vlgmr.msra.gmra.mrb[0].mxu1 %v136_v23 }
 0x1f0   :  { %v242_v25 = vpop.f32.mrb[0].mxu1 }
 0x1f1   :  { %v337_v26 = vpop.f32.mrb[1].mxu1  ;;  %v243_v28 = vadd.f32 %v281_v24, %v242_v25 }
 0x1f2   :  { %v245_v27 = vpop.f32.mrb[2].mxu1 }
 0x1f3   :  { %v246_v29 = vadd.f32 %v281_v24, %v245_v27  ;;  %v338_v30 = vpop.f32.mrb[3].mxu1 }
 0x1f5   :  { %v297_v31 = vpack.c.bf16 %v246_v29, %v243_v28 }
 0x1f7   :  { %298 = vst [vmem:[#allocation8] sm:$0xff] %v297_v31  }
 0x1f8   :  { %436 = shalt.err (!%p433_p0)
}
 0x1f9   :  { %s437_s14 = scalar_lea.hbm %s561_s5, 128 }
 0x1fa   :  { %p438_p1 = scmp.ne.s32.totalorder %s561_s5, %s437_s14  ;;  %p441_p2 = scmp.lt.u32.totalorder %s437_s14, %s561_s5 }
 0x1fc   :  { %p443_p3 = pnand %p441_p2, %p438_p1 }
 0x1fe   :  { %446 = shalt.err (!%p443_p3)
}
 0x1ff   :  { %270 = dma.vmem_to_hbm [thread:$0]  %s265_s12, 128, %s561_s5, [#allocation4], %s454_s28, %s454_s28, %s455_s29  }
 0x200   :  { %451 = dma.done.wait [#allocation4], 128  }
 0x201   :  { %452 = vsyncadd [#allocation4], 4294967168 }
 0x202   :  { %274 = vsyncpa [#allocation3], 1 }
 0x203   :  { %275 = vsyncpa [#allocation6], 1 }
 0x204   :  { %276 = vsyncpa [#allocation4], 1 }

</bundles_post_ra>
